<compile_context>
chip_gen: v7x
topology: tpu7x:2x2x1
jax: 0.10.0
libtpu: 0.0.40
codegen_flags: <defaults>
</compile_context>

<pallas_src>
import functools

import jax
import jax.numpy as jnp
from jax.experimental import pallas as pl
from jax.experimental.pallas import tpu as pltpu


# -----------------------------------------------------------------------------
# Fused kernel: features (1x1 conv) + global average pool + head logits.
# Grid = (N, HW // TILE_T); batch axis parallel, token axis arbitrary.
# -----------------------------------------------------------------------------
def _feat_pool_head_kernel(x_ref, wt_ref, bf_ref, wh_ref, bh_ref,
                           f_ref, pool_ref, logit_ref, *, inv_hw):
    # x_ref    : [1, Cin, T]  f32   x^T tile (channels on sublanes, tokens on lanes)
    # wt_ref   : [C, Cin]     bf16  backbone weight W^T
    # bf_ref   : [C, 1]       f32   backbone bias (column)
    # wh_ref   : [C, Kp]      f32   head weight, classes zero-padded to Kp lanes
    # bh_ref   : [1, Kp]      f32   head bias (zero on pad columns)
    # f_ref    : [1, C, T]    f32   NCHW feature-map tile (lane dense store)
    # pool_ref : [1, C, 1]    f32   pooled accumulator, resident over token axis
    # logit_ref: [1, 1, Kp]   f32   per-image padded logits, written at last tile
    t = pl.program_id(1)
    nt = pl.num_programs(1)

    x_bf = x_ref[0].astype(jnp.bfloat16)                    # in-kernel bf16 cast
    f = jnp.dot(wt_ref[...], x_bf,
                preferred_element_type=jnp.float32) + bf_ref[...]   # [C, T]
    f_ref[0] = f

    @pl.when(t == 0)
    def _():
        pool_ref[...] = jnp.zeros_like(pool_ref)

    pool_ref[...] += jnp.sum(f, axis=-1, keepdims=True)[None, :, :]  # [1, C, 1]

    @pl.when(t == nt - 1)
    def _():
        pooled = pool_ref[...] * inv_hw                      # [1, C, 1]  (mean)
        pool_ref[...] = pooled
        pooled_row = pooled[:, :, 0]                         # [1, C]
        lg = jnp.dot(pooled_row, wh_ref[...],
                     preferred_element_type=jnp.float32)     # [1, Kp]
        logit_ref[...] = (lg + bh_ref[...])[None, :, :]      # [1, 1, Kp]


def _vmem_tile_budget_bytes():
    """Generation-aware VMEM budget for the token tile (with headroom)."""
    cap = None
    try:
        cap = pltpu.get_tpu_info().vmem_capacity_bytes
    except Exception:
        cap = None
    if not cap:
        cap = 64 << 20          # conservative: v7x has the smallest VMEM
    return min(cap // 4, 24 << 20)


def _pick_token_tile(hw, cin, c, max_tile=8192):
    """Largest legal token tile under the VMEM budget (128-multiple or full HW)."""
    per_tok = 2 * 4 * (cin + c)            # f32 in + f32 out blocks, double-buffered
    cap = min(max_tile, _vmem_tile_budget_bytes() // per_tok)
    if hw <= cap:
        return hw                          # full extent is always a legal block
    t = (min(cap, hw) // 128) * 128
    while t >= 128:
        if hw % t == 0:
            return t
        t -= 128
    # TODO(synk): pad/mask ragged token counts instead of one oversized block.
    return hw


def _run_fused(x3d, wt, bf_col, wh_pad, bh_pad, tile_t):
    n, cin, hw = x3d.shape
    c = wt.shape[0]
    kp = wh_pad.shape[1]
    nt = hw // tile_t
    inv_hw = 1.0 / hw
    cost = pl.CostEstimate(
        flops=2 * n * hw * cin * c + 2 * n * c * kp,
        transcendentals=0,
        bytes_accessed=(n * cin * hw * 4 + n * c * hw * 4
                        + c * cin * 2 + c * 4 + c * kp * 4 + kp * 4
                        + n * c * 4 + n * kp * 4),
    )
    return pl.pallas_call(
        functools.partial(_feat_pool_head_kernel, inv_hw=inv_hw),
        out_shape=(
            jax.ShapeDtypeStruct((n, c, hw), jnp.float32),   # feat_4d (flat HW)
            jax.ShapeDtypeStruct((n, c, 1), jnp.float32),    # pooled mean
            jax.ShapeDtypeStruct((n, 1, kp), jnp.float32),   # padded logits
        ),
        grid=(n, nt),
        in_specs=[
            pl.BlockSpec((1, cin, tile_t), lambda i, t: (i, 0, t)),
            pl.BlockSpec((c, cin), lambda i, t: (0, 0)),
            pl.BlockSpec((c, 1), lambda i, t: (0, 0)),
            pl.BlockSpec((c, kp), lambda i, t: (0, 0)),
            pl.BlockSpec((1, kp), lambda i, t: (0, 0)),
        ],
        out_specs=(
            pl.BlockSpec((1, c, tile_t), lambda i, t: (i, 0, t)),
            pl.BlockSpec((1, c, 1), lambda i, t: (i, 0, 0)),
            pl.BlockSpec((1, 1, kp), lambda i, t: (i, 0, 0)),
        ),
        compiler_params=pltpu.CompilerParams(
            dimension_semantics=("parallel", "arbitrary"),
            vmem_limit_bytes=32 << 20),
        cost_estimate=cost,
    )(x3d, wt, bf_col, wh_pad, bh_pad)


class TeacherSwinWrapperPallas:
    """JAX/Pallas port of TeacherSwinWrapper.forward (inference, no grad)."""

    def __init__(self, c_in=4, c_feat=32, num_classes=10, key=None):
        if key is None:
            key = jax.random.PRNGKey(0)
        k1, k2, k3, k4 = jax.random.split(key, 4)
        # synthetic backbone "forward_features" params (1x1 conv), natural layout
        self.w_feat = jax.random.normal(k1, (c_in, c_feat), jnp.float32) * 0.5
        self.b_feat = jax.random.normal(k2, (c_feat,), jnp.float32) * 0.1
        # backbone.head params (Linear: c_feat -> num_classes)
        self.w_head = jax.random.normal(k3, (c_feat, num_classes), jnp.float32) * 2.0
        self.b_head = jax.random.normal(k4, (num_classes,), jnp.float32) * 0.1

        self.c_in = c_in
        self.c_feat = c_feat
        self.num_classes = num_classes

        # --- kernel-layout copies ------------------------------------------
        # feature matmul runs transposed (tokens on lanes): W^T [C, Cin], bf16
        self.w_feat_t = jnp.asarray(self.w_feat.T, jnp.bfloat16)
        self.b_feat_col = self.b_feat.reshape(c_feat, 1).astype(jnp.float32)
        # head padded to a 128-lane class dim (zero pad; softmax runs on the
        # sliced real classes in JAX, so no -inf/-1e30 trick is needed)
        self.k_pad = ((num_classes + 127) // 128) * 128
        self.w_head_pad = (jnp.zeros((c_feat, self.k_pad), jnp.float32)
                           .at[:, :num_classes].set(self.w_head))
        self.b_head_pad = (jnp.zeros((1, self.k_pad), jnp.float32)
                           .at[0, :num_classes].set(self.b_head))

    @functools.partial(jax.jit, static_argnums=0)
    def _forward_jit(self, x_nchw):
        n, cin, h, w = x_nchw.shape
        hw = h * w
        # NCHW is already [channels, tokens] per image == x^T; just flatten HW.
        x3d = x_nchw.reshape(n, cin, hw).astype(jnp.float32)

        tile_t = _pick_token_tile(hw, cin, self.c_feat)
        f_flat, pooled, logit_pad = _run_fused(
            x3d, self.w_feat_t, self.b_feat_col,
            self.w_head_pad, self.b_head_pad, tile_t)

        f4d = f_flat.reshape(n, self.c_feat, h, w)   # NCHW, no transpose needed
        f2d = pooled[:, :, 0]                        # [N, C]
        logit = logit_pad[:, 0, : self.num_classes]  # [N, K]
        return f4d, f2d, logit

    @functools.partial(jax.jit, static_argnums=0)
    def _ce_jit(self, logit, y_i32):
        logp = jax.nn.log_softmax(logit, axis=-1)
        nll = -jnp.take_along_axis(logp, y_i32[:, None], axis=-1)
        return jnp.mean(nll)

    def __call__(self, x_nchw, y=None):
        f4d, f2d, logit = self._forward_jit(x_nchw)
        ce_loss = None
        if y is not None:
            ce_loss = self._ce_jit(logit, jnp.asarray(y, jnp.int32))
        feature_dict = {"feat_4d": f4d, "feat_2d": f2d}
        return feature_dict, logit, ce_loss


def _reference(model, x_nchw, y):
    """Pure-JAX reference for correctness check (same bf16 feature matmul)."""
    n, cin, h, w = x_nchw.shape
    x_bf = x_nchw.reshape(n, cin, h * w).astype(jnp.bfloat16)
    f = jnp.einsum("ck,nkt->nct", model.w_feat_t, x_bf,
                   preferred_element_type=jnp.float32)
    f = f + model.b_feat_col[None, :, :]                     # [N, C, HW]
    f4d = f.reshape(n, model.c_feat, h, w)
    f2d = jnp.mean(f, axis=-1)                               # [N, C]
    logit = jnp.dot(f2d, model.w_head,
                    precision=jax.lax.Precision.HIGHEST) + model.b_head
    logp = jax.nn.log_softmax(logit, axis=-1)
    loss = -jnp.mean(logp[jnp.arange(n), y])
    return f4d, f2d, logit, loss


if __name__ == "__main__":
    key = jax.random.PRNGKey(0)
    kx, ky = jax.random.split(key)

    N, C_IN, H, W = 2, 4, 32, 32     # HW = 1024 -> single full-extent token tile
    C_FEAT, NUM_CLASSES = 32, 10

    x = jax.random.normal(kx, (N, C_IN, H, W), jnp.float32)  # NCHW input
    y = jax.random.randint(ky, (N,), 0, NUM_CLASSES)

    model = TeacherSwinWrapperPallas(
        c_in=C_IN, c_feat=C_FEAT, num_classes=NUM_CLASSES,
        key=jax.random.PRNGKey(0))

    feats, logit, ce_loss = model(x, y)
    jax.block_until_ready((feats["feat_4d"], feats["feat_2d"], logit, ce_loss))

    # y=None path: loss math skipped entirely, ce_loss must be None
    feats_nl, logit_nl, ce_none = model(x, None)
    jax.block_until_ready(logit_nl)
    assert ce_none is None

    # sanity check against a pure-JAX reference
    r4d, r2d, rlogit, rloss = _reference(model, x, y)
    assert feats["feat_4d"].shape == (N, C_FEAT, H, W)
    assert feats["feat_2d"].shape == (N, C_FEAT)
    assert logit.shape == (N, NUM_CLASSES)
    assert jnp.allclose(feats["feat_4d"], r4d, atol=1e-4)
    assert jnp.allclose(feats["feat_2d"], r2d, atol=1e-3)
    assert jnp.allclose(logit, rlogit, atol=2e-3)
    assert jnp.allclose(ce_loss, rloss, atol=2e-3)

    print("KERNEL_OK")
</pallas_src>

<mosaic_0001>
module attributes {stable_mosaic.version = 11 : i64} {
  func.func @_feat_pool_head_kernel(%arg0: i32, %arg1: i32, %arg2: memref<1x4x1024xf32, #tpu.memory_space<vmem>>, %arg3: memref<32x4xbf16, #tpu.memory_space<vmem>>, %arg4: memref<32x1xf32, #tpu.memory_space<vmem>>, %arg5: memref<32x128xf32, #tpu.memory_space<vmem>>, %arg6: memref<1x128xf32, #tpu.memory_space<vmem>>, %arg7: memref<1x32x1024xf32, #tpu.memory_space<vmem>>, %arg8: memref<1x32x1xf32, #tpu.memory_space<vmem>>, %arg9: memref<1x1x128xf32, #tpu.memory_space<vmem>>) attributes {dimension_semantics = [#tpu.dimension_semantics<parallel>, #tpu.dimension_semantics<arbitrary>], iteration_bounds = array<i64: 2, 1>, scalar_prefetch = 0 : i64, scratch_operands = 0 : i64, tpu.core_type = #tpu.core_type<tc>, window_params = [{transform_indices = @transform_0, window_bounds = array<i64: 1, 4, 1024>}, {pipeline_mode = #tpu.pipeline_mode<synchronous>, transform_indices = @transform_1, window_bounds = array<i64: 32, 4>}, {pipeline_mode = #tpu.pipeline_mode<synchronous>, transform_indices = @transform_2, window_bounds = array<i64: 32, 1>}, {pipeline_mode = #tpu.pipeline_mode<synchronous>, transform_indices = @transform_3, window_bounds = array<i64: 32, 128>}, {pipeline_mode = #tpu.pipeline_mode<synchronous>, transform_indices = @transform_4, window_bounds = array<i64: 1, 128>}, {transform_indices = @transform_5, window_bounds = array<i64: 1, 32, 1024>}, {transform_indices = @transform_6, window_bounds = array<i64: 1, 32, 1>}, {transform_indices = @transform_7, window_bounds = array<i64: 1, 1, 128>}]} {
    %c0 = arith.constant 0 : index
    %c0_0 = arith.constant 0 : index
    %c0_1 = arith.constant 0 : index
    %0 = vector.load %arg2[%c0, %c0_0, %c0_1] : memref<1x4x1024xf32, #tpu.memory_space<vmem>>, vector<1x4x1024xf32>
    %1 = vector.shape_cast %0 : vector<1x4x1024xf32> to vector<4x1024xf32>
    %2 = arith.truncf %1 : vector<4x1024xf32> to vector<4x1024xbf16>
    %c0_2 = arith.constant 0 : index
    %c0_3 = arith.constant 0 : index
    %3 = vector.load %arg3[%c0_2, %c0_3] : memref<32x4xbf16, #tpu.memory_space<vmem>>, vector<32x4xbf16>
    %cst = arith.constant dense<0.000000e+00> : vector<32x1024xf32>
    %4 = tpu.matmul %3, %2, %cst {dimension_numbers = #tpu.dot_dimension_numbers<[1], [0], [0], [1], [0, 0, 1, 1], [], []>} : vector<32x4xbf16>, vector<4x1024xbf16>, vector<32x1024xf32> -> vector<32x1024xf32>
    %c0_4 = arith.constant 0 : index
    %c0_5 = arith.constant 0 : index
    %5 = vector.load %arg4[%c0_4, %c0_5] : memref<32x1xf32, #tpu.memory_space<vmem>>, vector<32x1xf32>
    %6 = vector.broadcast %5 : vector<32x1xf32> to vector<32x1024xf32>
    %7 = arith.addf %4, %6 : vector<32x1024xf32>
    %c0_6 = arith.constant 0 : index
    %c0_7 = arith.constant 0 : index
    %c0_8 = arith.constant 0 : index
    %8 = vector.load %arg7[%c0_6, %c0_7, %c0_8] : memref<1x32x1024xf32, #tpu.memory_space<vmem>>, vector<1x32x1024xf32>
    %9 = vector.shape_cast %8 : vector<1x32x1024xf32> to vector<32x1024xf32>
    %10 = vector.shape_cast %7 : vector<32x1024xf32> to vector<1x32x1024xf32>
    tpu.vector_store %arg7[%c0_6, %c0_7, %c0_8], %10 {strides = array<i32>} : memref<1x32x1024xf32, #tpu.memory_space<vmem>>, vector<1x32x1024xf32>,
    %c0_i32 = arith.constant 0 : i32
    %11 = arith.cmpi eq, %arg1, %c0_i32 : i32
    %12 = arith.extui %11 : i1 to i32
    %c0_i32_9 = arith.constant 0 : i32
    %13 = arith.cmpi ne, %12, %c0_i32_9 : i32
    scf.if %13 {
      %cst_19 = arith.constant 0.000000e+00 : f32
      %23 = vector.broadcast %cst_19 : f32 to vector<1x32x1xf32>
      %c0_20 = arith.constant 0 : index
      %c0_21 = arith.constant 0 : index
      %c0_22 = arith.constant 0 : index
      %24 = vector.load %arg8[%c0_20, %c0_21, %c0_22] : memref<1x32x1xf32, #tpu.memory_space<vmem>>, vector<1x32x1xf32>
      tpu.vector_store %arg8[%c0_20, %c0_21, %c0_22], %23 {strides = array<i32>} : memref<1x32x1xf32, #tpu.memory_space<vmem>>, vector<1x32x1xf32>,
    } else {
    }
    %c0_10 = arith.constant 0 : index
    %c0_11 = arith.constant 0 : index
    %c0_12 = arith.constant 0 : index
    %14 = vector.load %arg8[%c0_10, %c0_11, %c0_12] : memref<1x32x1xf32, #tpu.memory_space<vmem>>, vector<1x32x1xf32>
    %cst_13 = arith.constant dense<0.000000e+00> : vector<32xf32>
    %15 = vector.multi_reduction <add>, %7, %cst_13 [1] : vector<32x1024xf32> to vector<32xf32>
    %16 = vector.shape_cast %15 : vector<32xf32> to vector<32x1xf32>
    %17 = vector.shape_cast %16 : vector<32x1xf32> to vector<1x32x1xf32>
    %18 = arith.addf %14, %17 : vector<1x32x1xf32>
    %c0_14 = arith.constant 0 : index
    %c0_15 = arith.constant 0 : index
    %c0_16 = arith.constant 0 : index
    %19 = vector.load %arg8[%c0_14, %c0_15, %c0_16] : memref<1x32x1xf32, #tpu.memory_space<vmem>>, vector<1x32x1xf32>
    tpu.vector_store %arg8[%c0_14, %c0_15, %c0_16], %18 {strides = array<i32>} : memref<1x32x1xf32, #tpu.memory_space<vmem>>, vector<1x32x1xf32>,
    %c0_i32_17 = arith.constant 0 : i32
    %20 = arith.cmpi eq, %arg1, %c0_i32_17 : i32
    %21 = arith.extui %20 : i1 to i32
    %c0_i32_18 = arith.constant 0 : i32
    %22 = arith.cmpi ne, %21, %c0_i32_18 : i32
    scf.if %22 {
      %c0_19 = arith.constant 0 : index
      %c0_20 = arith.constant 0 : index
      %c0_21 = arith.constant 0 : index
      %23 = vector.load %arg8[%c0_19, %c0_20, %c0_21] : memref<1x32x1xf32, #tpu.memory_space<vmem>>, vector<1x32x1xf32>
      %cst_22 = arith.constant 9.765625E-4 : f32
      %24 = vector.broadcast %cst_22 : f32 to vector<1x32x1xf32>
      %25 = arith.mulf %23, %24 : vector<1x32x1xf32>
      %c0_23 = arith.constant 0 : index
      %c0_24 = arith.constant 0 : index
      %c0_25 = arith.constant 0 : index
      %26 = vector.load %arg8[%c0_23, %c0_24, %c0_25] : memref<1x32x1xf32, #tpu.memory_space<vmem>>, vector<1x32x1xf32>
      tpu.vector_store %arg8[%c0_23, %c0_24, %c0_25], %25 {strides = array<i32>} : memref<1x32x1xf32, #tpu.memory_space<vmem>>, vector<1x32x1xf32>,
      %27 = vector.shape_cast %25 : vector<1x32x1xf32> to vector<1x32xf32>
      %c0_26 = arith.constant 0 : index
      %c0_27 = arith.constant 0 : index
      %28 = vector.load %arg5[%c0_26, %c0_27] : memref<32x128xf32, #tpu.memory_space<vmem>>, vector<32x128xf32>
      %cst_28 = arith.constant dense<0.000000e+00> : vector<1x128xf32>
      %29 = tpu.matmul %27, %28, %cst_28 {dimension_numbers = #tpu.dot_dimension_numbers<[1], [0], [0], [1], [0, 0, 1, 1], [], []>} : vector<1x32xf32>, vector<32x128xf32>, vector<1x128xf32> -> vector<1x128xf32>
      %c0_29 = arith.constant 0 : index
      %c0_30 = arith.constant 0 : index
      %30 = vector.load %arg6[%c0_29, %c0_30] : memref<1x128xf32, #tpu.memory_space<vmem>>, vector<1x128xf32>
      %31 = arith.addf %29, %30 : vector<1x128xf32>
      %32 = vector.shape_cast %31 : vector<1x128xf32> to vector<1x1x128xf32>
      %c0_31 = arith.constant 0 : index
      %c0_32 = arith.constant 0 : index
      %c0_33 = arith.constant 0 : index
      %33 = vector.load %arg9[%c0_31, %c0_32, %c0_33] : memref<1x1x128xf32, #tpu.memory_space<vmem>>, vector<1x1x128xf32>
      tpu.vector_store %arg9[%c0_31, %c0_32, %c0_33], %32 {strides = array<i32>} : memref<1x1x128xf32, #tpu.memory_space<vmem>>, vector<1x1x128xf32>,
    } else {
    }
    return
  }
  func.func @transform_0(%arg0: i32, %arg1: i32) -> (i32, i32, i32) {
    %c0_i32 = arith.constant 0 : i32
    %c0_i32_0 = arith.constant 0 : i32
    return %arg0, %c0_i32, %arg1 : i32, i32, i32
  }
  func.func @transform_1(%arg0: i32, %arg1: i32) -> (i32, i32) {
    %c0_i32 = arith.constant 0 : i32
    %c0_i32_0 = arith.constant 0 : i32
    %c0_i32_1 = arith.constant 0 : i32
    return %c0_i32, %c0_i32_0 : i32, i32
  }
  func.func @transform_2(%arg0: i32, %arg1: i32) -> (i32, i32) {
    %c0_i32 = arith.constant 0 : i32
    %c0_i32_0 = arith.constant 0 : i32
    %c0_i32_1 = arith.constant 0 : i32
    return %c0_i32, %c0_i32_0 : i32, i32
  }
  func.func @transform_3(%arg0: i32, %arg1: i32) -> (i32, i32) {
    %c0_i32 = arith.constant 0 : i32
    %c0_i32_0 = arith.constant 0 : i32
    %c0_i32_1 = arith.constant 0 : i32
    return %c0_i32, %c0_i32_0 : i32, i32
  }
  func.func @transform_4(%arg0: i32, %arg1: i32) -> (i32, i32) {
    %c0_i32 = arith.constant 0 : i32
    %c0_i32_0 = arith.constant 0 : i32
    %c0_i32_1 = arith.constant 0 : i32
    return %c0_i32, %c0_i32_0 : i32, i32
  }
  func.func @transform_5(%arg0: i32, %arg1: i32) -> (i32, i32, i32) {
    %c0_i32 = arith.constant 0 : i32
    %c0_i32_0 = arith.constant 0 : i32
    return %arg0, %c0_i32, %arg1 : i32, i32, i32
  }
  func.func @transform_6(%arg0: i32, %arg1: i32) -> (i32, i32, i32) {
    %c0_i32 = arith.constant 0 : i32
    %c0_i32_0 = arith.constant 0 : i32
    %c0_i32_1 = arith.constant 0 : i32
    return %arg0, %c0_i32, %c0_i32_0 : i32, i32, i32
  }
  func.func @transform_7(%arg0: i32, %arg1: i32) -> (i32, i32, i32) {
    %c0_i32 = arith.constant 0 : i32
    %c0_i32_0 = arith.constant 0 : i32
    %c0_i32_1 = arith.constant 0 : i32
    return %arg0, %c0_i32, %c0_i32_0 : i32, i32, i32
  }
}

</mosaic_0001>

<bundles_post_ra>
// kernel: _forward_jit.1
= control target key start
LH: loop header
LB: loop body
LE: loop exit
PB: predicated region body
PF: predicated region fallthrough
CT: control target
= control target key end

     0   :  { %13 = vsyncpa [#allocation3], 0  ;;  %s1573_s0 = inlined_call_operand.vmem [shape: f32[2,4,1024], index: 0, kind: input, shape index: {}]   ;;  %s1574_s1 = inlined_call_operand.vmem [shape: bf16[32,4], index: 1, kind: input, shape index: {}]   ;;  %s1575_s2 = inlined_call_operand.vmem [shape: f32[32,1], index: 2, kind: input, shape index: {}]   ;;  %s1576_s3 = inlined_call_operand.vmem [shape: f32[32,128], index: 3, kind: input, shape index: {}]   ;;  %s1577_s4 = inlined_call_operand.vmem [shape: f32[1,128], index: 4, kind: input, shape index: {}]   ;;  %s1578_s5 = inlined_call_operand.vmem [shape: f32[2,32,1024], index: 5, kind: output, shape index: {0}]   ;;  %s1579_s6 = inlined_call_operand.vmem [shape: f32[2,32,1], index: 6, kind: output, shape index: {1}]   ;;  %s1580_s7 = inlined_call_operand.hbm [shape: f32[2,1,128], index: 7, kind: output, shape index: {2}]  }
   0x1   :  { %15 = vsyncpa [#allocation3 + $0x1], 0  ;;  %s1285_s24 = smov 0   ;;  %s1287_s25 = smov 0  }
   0x2   :  { %s1289_s26 = smov 0   ;;  %s1291_s27 = smov 0  }
   0x3   :  { %s1293_s28 = smov 0   ;;  %s1295_s29 = smov 0  }
   0x4 LB: > { %s1039_s30 = sadd.s32 4294967295, %s1238_s29   ;;  %s1040_s8 = sadd.s32 4294967294, %s1238_s29   ;;  %s1238_s29 = sphi %s1295_s29, %s21_s29   ;;  %s1234_s28 = sphi %s1293_s28, %s1587_s28   ;;  %s1230_s27 = sphi %s1291_s27, %s1586_s27   ;;  %s1226_s26 = sphi %s1289_s26, %s1585_s26   ;;  %s1222_s25 = sphi %s1287_s25, %s1584_s25   ;;  %s1218_s24 = sphi %s1285_s24, %s1583_s24  }
   0x5   : > { %s33_s9 = sadd.s32 1, %s1234_s28  ;;  %s206_s10 = sadd.s32 1, %s1226_s26 }
   0x6   : > { %p35_p0 = scmp.ge.s32.totalorder %s33_s9, 2  ;;  %p216_p1 = scmp.ne.s32.totalorder %s1226_s26, %s1222_s25 }
   0x7   : > { %p217_p2 = scmp.eq.s32.totalorder %s1039_s30, 1  ;;  %p222_p3 = scmp.ne.s32.totalorder %s1222_s25, %s1218_s24 }
   0x8   : > { %s1589_s9 = smov (%p35_p0, %s33_s9), 0  ;;  %p223_p5 = scmp.eq.s32.totalorder %s1040_s8, 1 }
   0x9   : > { %p1325_p4 = por %p217_p2, %p216_p1  ;;  %s203_s12 = ssub.s32 %s1234_s28, %s1589_s9 }
   0xa   : > { %p1043_p6 = scmp.ge.s32.totalorder %s1238_s29, 1  ;;  %p204_p7 = scmp.eq.s32.totalorder %s203_s12, 0 }
   0xb   : > { %p1332_p8 = por %p223_p5, %p222_p3  ;;  %p266_p9 = scmp.lt.s32.totalorder %s1238_s29, 3 }
   0xc   : > { %s1338_s14 = scalar_select %p204_p7, %s1226_s26, %s206_s10  }
   0xd   : > { %p267_p10 = pnand %p1043_p6, %p266_p9 }
   0xe   : > { %p316_p11 = scmp.lt.s32.totalorder (!%p267_p10), %s1230_s27, 1  ;;  %v1240_v0 = vmov (!%p267_p10), 0   ;;  %v369_v1 = vld [vmem:[%s1575_s2] sm:$0xff] (!%p267_p10)  ;;  %v371_v2 = vld [vmem:[%s1575_s2 + $0x10] sm:$0xff] (!%p267_p10)  ;;  %v370_v3 = vld [vmem:[%s1575_s2 + $0x8] sm:$0xff] (!%p267_p10)  ;;  %vm410_vm0 = vcmask (!%p267_p10), 1041408  }
   0xf   : > { %270 = sbr.rel (%p267_p10) target bundleno = 798 (0x31e), region = 40  ;;  %467 = vmatprep.mubr.bf16.mxu0 (!%p267_p10), %v1240_v0  ;;  %520 = vmatprep.mubr.bf16.mxu1 (!%p267_p10), %v1240_v0  ;;  %v372_v4 = vld [vmem:[%s1575_s2 + $0x18] sm:$0xff] (!%p267_p10)  ;;  %v1156_v23 = vld [vmem:[%s1574_s1] sm:$0xff] (!%p267_p10)   ;;  %vm403_vm1 = vcmask (!%p267_p10), 31744   ;;  %v1159_v26 = vld [vmem:[%s1574_s1 + $0x8] sm:$0xff] (!%p267_p10)   ;;  %vm683_vm2 = vcmask (!%p267_p10), 7168  }
  0x10   : > { %1152 = vset.pattern.permute.xlu0 (!%p267_p10), %v1240_v0  ;;  %1153 = vset.pattern.permute.xlu1 (!%p267_p10), %v1240_v0  ;;  %v1241_v27 = vmov (!%p267_p10), 0.0   ;;  %vm1243_vm3 = vmmov (!%p267_p10), 0   ;;  %vm784_vm4 = vcmask (!%p267_p10), 130112   ;;  %vm791_vm5 = vcmask (!%p267_p10), 195712  }
  0x11   : > { %375 = vperm.xlu0 (!%p267_p10), %1152, %v369_v1   ;;  %385 = vperm.xlu1 (!%p267_p10), %1153, %v371_v2   ;;  %vm798_vm6 = vcmask (!%p267_p10), 261312   ;;  %vm800_vm7 = vcmask (!%p267_p10), 261120  }
  0x15   : > { %380 = vperm.xlu0 (!%p267_p10), %1152, %v370_v3   ;;  %390 = vperm.xlu1 (!%p267_p10), %1153, %v372_v4  }
  0x16   : > { %s1342_s15 = scalar_select %p316_p11, %s1230_s27, 1 }
  0x18   : > { %s1068_s20 = sshll.u32 %s1342_s15, 5 }
  0x19   : > { %s323_s8 = scalar_lea.vmem %s1573_s0, %s1068_s20  ;;  %s1389_s23 = scalar_lea.vmem %s1579_s6, %s1068_s20 }
  0x1a   : > { %v341_v5 = vld [vmem:[%s323_s8] sm:$0xff]  ;;  %v342_v6 = vld [vmem:[%s323_s8 + $0x8] sm:$0xff]  ;;  %v343_v7 = vld [vmem:[%s323_s8 + $0x10] sm:$0xff]  ;;  %684 = vst.msk [vmem:[%s1389_s23] sm:$0xff] %vm683_vm2, %v1241_v27  ;;  %s1069_s20 = sshll.u32 %s1342_s15, 8 }
  0x1b   : > { %v349_v8 = vcombine.high %v341_v5, %v341_v5  ;;  %v350_v9 = vcombine.high %v342_v6, %v342_v6  ;;  %v357_v10 = vpack.c.bf16 %v341_v5, %v341_v5  ;;  %v359_v11 = vpack.c.bf16 %v342_v6, %v342_v6  ;;  %v344_v12 = vld [vmem:[%s323_s8 + $0x18] sm:$0xff]  ;;  %685 = vst.msk [vmem:[%s1389_s23 + $0x8] sm:$0xff] %vm683_vm2, %v1241_v27  ;;  %s1413_s10 = scalar_lea.vmem %s1578_s5, %s1069_s20  ;;  %s1065_s8 = sshll.u32 %s1230_s27, 4 }
  0x1c   : > { %v351_v13 = vcombine.high %v343_v7, %v343_v7  ;;  %v361_v14 = vpack.c.bf16 %v343_v7, %v343_v7  ;;  %v352_v15 = vcombine.high %v344_v12, %v344_v12  ;;  %v363_v16 = vpack.c.bf16 %v344_v12, %v344_v12  ;;  %686 = vst.msk [vmem:[%s1389_s23 + $0x10] sm:$0xff] %vm683_vm2, %v1241_v27  ;;  %s1526_s17 = scalar_lea.hbm %s1580_s7, %s1065_s8  ;;  %s1244_s27 = smov [#allocation2]  }
  0x1d   : > { %v358_v17 = vpack.c.bf16 %v349_v8, %v349_v8  ;;  %v360_v18 = vpack.c.bf16 %v350_v9, %v350_v9  ;;  %v412_v19 = vsel %vm410_vm0, %v357_v10, 0  ;;  %v418_v20 = vsel %vm410_vm0, %v359_v11, 0  ;;  %687 = vst.msk [vmem:[%s1389_s23 + $0x18] sm:$0xff] %vm683_vm2, %v1241_v27  ;;  %s1164_s21 = sshll.u32 %s1244_s27, 4  ;;  %s1165_s21 = int_to_ptr.vmem [resolvable:$false] %s1164_s21 }
  0x1e   : > { %v362_v21 = vpack.c.bf16 %v351_v13, %v351_v13  ;;  %v364_v22 = vpack.c.bf16 %v352_v15, %v352_v15  ;;  %v424_v24 = vsel %vm410_vm0, %v361_v14, 0  ;;  %v430_v25 = vsel %vm410_vm0, %v363_v16, 0  ;;  %s1166_s22 = scalar_lea.vmem %s1165_s21, 32 }
  0x1f   : > { %1052 = vmatprep.subr.msk.bf16.mxu0 %vm410_vm0, %v358_v17  ;;  %1055 = vmatprep.subr.msk.bf16.mxu1 %vm410_vm0, %v360_v18 }
  0x20   : > { %436 = vmatpush1.bf16.msra.mxu0 %v412_v19  ;;  %489 = vmatpush1.bf16.msra.mxu1 %v418_v20 }
  0x21   : > { %1058 = vmatprep.subr.msk.bf16.mxu0 %vm410_vm0, %v362_v21  ;;  %1061 = vmatprep.subr.msk.bf16.mxu1 %vm410_vm0, %v364_v22 }
  0x23   : > { %1053 = vmatmul.mubr.msk.bf16.vlgmr.msra.gmra.mrb[0].mxu0 %vm403_vm1, %v1156_v23  ;;  %1056 = vmatmul.mubr.msk.bf16.vlgmr.msra.gmra.mrb[0].mxu1 %vm403_vm1, %v1156_v23 }
  0x24   : > { %542 = vmatpush1.bf16.msra.mxu0 %v424_v24  ;;  %595 = vmatpush1.bf16.msra.mxu1 %v430_v25 }
  0x25   : > { %477 = vmatprep.mubr.bf16.mxu0 %v1240_v0  ;;  %530 = vmatprep.mubr.bf16.mxu1 %v1240_v0 }
  0x2b   : > { %1054 = vmatmul.mubr.msk.bf16.gmra.mrb[4].mxu0 %vm403_vm1, %v1159_v26  ;;  %1057 = vmatmul.mubr.msk.bf16.gmra.mrb[4].mxu1 %vm403_vm1, %v1159_v26 }
  0x2c   : > { %573 = vmatprep.mubr.bf16.mxu0 %v1240_v0  ;;  %626 = vmatprep.mubr.bf16.mxu1 %v1240_v0 }
  0x33   : > { %1059 = vmatmul.mubr.msk.bf16.vlgmr.msra.gmra.mrb[8].mxu0 %vm403_vm1, %v1156_v23  ;;  %1062 = vmatmul.mubr.msk.bf16.vlgmr.msra.gmra.mrb[8].mxu1 %vm403_vm1, %v1156_v23 }
  0x34   : > { %583 = vmatprep.mubr.bf16.mxu0 %v1240_v0  ;;  %636 = vmatprep.mubr.bf16.mxu1 %v1240_v0 }
  0x3b   : > { %1060 = vmatmul.mubr.msk.bf16.gmra.mrb[12].mxu0 %vm403_vm1, %v1159_v26  ;;  %1063 = vmatmul.mubr.msk.bf16.gmra.mrb[12].mxu1 %vm403_vm1, %v1159_v26 }
  0x3c   : > { %1084 = vmatprep.mubr.msk.f32.mxu0 %vm1243_vm3, %v1241_v27 }
  0x90   : > { %v1403_v28 = vpop.permute.xlu0 %375  ;;  %v1408_v30 = vpop.permute.xlu1 %385 }
  0x94   : > { %v1406_v29 = vpop.permute.xlu0 %380  ;;  %v1431_v50 = vpop.permute.xlu1 %390 }
  0xf6   : > { %v469_v31 = vpop.f32.mrb[0].mxu0  ;;  %v522_v32 = vpop.f32.mrb[0].mxu1 }
  0xf7   : > { %v470_v33 = vadd.f32 %v469_v31, %v1403_v28  ;;  %v471_v34 = vpop.f32.mrb[1].mxu0  ;;  %v523_v35 = vadd.f32 %v522_v32, %v1403_v28  ;;  %v524_v36 = vpop.f32.mrb[1].mxu1 }
  0xf8   : > { %v472_v37 = vadd.f32 %v471_v34, %v1403_v28  ;;  %v473_v38 = vpop.f32.mrb[2].mxu0  ;;  %v525_v39 = vadd.f32 %v524_v36, %v1403_v28  ;;  %v526_v40 = vpop.f32.mrb[2].mxu1 }
  0xf9   : > { %647 = vst [vmem:[%s1413_s10] sm:$0xff] %v470_v33  ;;  %v474_v41 = vadd.f32 %v473_v38, %v1406_v29  ;;  %649 = vst [vmem:[%s1413_s10 + $0x10] sm:$0xff] %v523_v35  ;;  %v475_v42 = vpop.f32.mrb[3].mxu0  ;;  %v527_v43 = vadd.f32 %v526_v40, %v1406_v29  ;;  %v528_v44 = vpop.f32.mrb[3].mxu1 }
  0xfa   : > { %648 = vst [vmem:[%s1413_s10 + $0x8] sm:$0xff] %v472_v37  ;;  %v692_v45 = vadd.f32 %v472_v37, %v470_v33  ;;  %v476_v46 = vadd.f32 %v475_v42, %v1406_v29  ;;  %650 = vst [vmem:[%s1413_s10 + $0x18] sm:$0xff] %v525_v39  ;;  %v529_v47 = vadd.f32 %v528_v44, %v1406_v29 }
  0xfb   : > { %655 = vst [vmem:[%s1413_s10 + $0x40] sm:$0xff] %v474_v41  ;;  %657 = vst [vmem:[%s1413_s10 + $0x50] sm:$0xff] %v527_v43 }
  0xfc   : > { %v693_v48 = vadd.f32 %v692_v45, %v523_v35  ;;  %656 = vst [vmem:[%s1413_s10 + $0x48] sm:$0xff] %v476_v46  ;;  %v701_v49 = vadd.f32 %v476_v46, %v474_v41  ;;  %658 = vst [vmem:[%s1413_s10 + $0x58] sm:$0xff] %v529_v47 }
  0xfe   : > { %v694_v51 = vadd.f32 %v693_v48, %v525_v39  ;;  %v702_v52 = vadd.f32 %v701_v49, %v527_v43  ;;  %v479_v53 = vpop.f32.mrb[4].mxu0  ;;  %v532_v54 = vpop.f32.mrb[4].mxu1 }
  0xff   : > { %v480_v55 = vadd.f32 %v479_v53, %v1408_v30  ;;  %v481_v56 = vpop.f32.mrb[5].mxu0  ;;  %v533_v57 = vadd.f32 %v532_v54, %v1408_v30  ;;  %v534_v58 = vpop.f32.mrb[5].mxu1 }
 0x100   : > { %v703_v59 = vadd.f32 %v702_v52, %v529_v47  ;;  %v482_v60 = vadd.f32 %v481_v56, %v1408_v30  ;;  %v483_v61 = vpop.f32.mrb[6].mxu0  ;;  %v535_v62 = vadd.f32 %v534_v58, %v1408_v30  ;;  %v536_v63 = vpop.f32.mrb[6].mxu1 }
 0x101   : > { %663 = vst [vmem:[%s1413_s10 + $0x80] sm:$0xff] %v480_v55  ;;  %v484_v0 = vadd.f32 %v483_v61, %v1431_v50  ;;  %665 = vst [vmem:[%s1413_s10 + $0x90] sm:$0xff] %v533_v57  ;;  %v485_v1 = vpop.f32.mrb[7].mxu0  ;;  %v537_v2 = vadd.f32 %v536_v63, %v1431_v50  ;;  %v538_v3 = vpop.f32.mrb[7].mxu1 }
 0x102   : > { %664 = vst [vmem:[%s1413_s10 + $0x88] sm:$0xff] %v482_v60  ;;  %v710_v4 = vadd.f32 %v482_v60, %v480_v55  ;;  %v486_v5 = vadd.f32 %v485_v1, %v1431_v50  ;;  %666 = vst [vmem:[%s1413_s10 + $0x98] sm:$0xff] %v535_v62  ;;  %v539_v6 = vadd.f32 %v538_v3, %v1431_v50 }
 0x103   : > { %671 = vst [vmem:[%s1413_s10 + $0xc0] sm:$0xff] %v484_v0  ;;  %673 = vst [vmem:[%s1413_s10 + $0xd0] sm:$0xff] %v537_v2 }
 0x104   : > { %v711_v7 = vadd.f32 %v710_v4, %v533_v57  ;;  %672 = vst [vmem:[%s1413_s10 + $0xc8] sm:$0xff] %v486_v5  ;;  %v719_v8 = vadd.f32 %v486_v5, %v484_v0  ;;  %674 = vst [vmem:[%s1413_s10 + $0xd8] sm:$0xff] %v539_v6  ;;  %v689_v0 = vld [vmem:[%s1389_s23 + $0x8] sm:$0xff]  ;;  %v690_v4 = vld [vmem:[%s1389_s23 + $0x10] sm:$0xff] }
 0x106   : > { %v712_v9 = vadd.f32 %v711_v7, %v535_v62  ;;  %v720_v10 = vadd.f32 %v719_v8, %v537_v2  ;;  %v575_v11 = vpop.f32.mrb[8].mxu0  ;;  %v628_v12 = vpop.f32.mrb[8].mxu1  ;;  %v688_v62 = vld [vmem:[%s1389_s23] sm:$0xff]  ;;  %v691_v7 = vld [vmem:[%s1389_s23 + $0x18] sm:$0xff] }
 0x107   : > { %v576_v13 = vadd.f32 %v575_v11, %v1403_v28  ;;  %v629_v14 = vadd.f32 %v628_v12, %v1403_v28  ;;  %v577_v15 = vpop.f32.mrb[9].mxu0  ;;  %v630_v16 = vpop.f32.mrb[9].mxu1 }
 0x108   : > { %v721_v17 = vadd.f32 %v720_v10, %v539_v6  ;;  %v578_v18 = vadd.f32 %v577_v15, %v1403_v28  ;;  %v631_v19 = vadd.f32 %v630_v16, %v1403_v28  ;;  %v579_v20 = vpop.f32.mrb[10].mxu0  ;;  %v632_v21 = vpop.f32.mrb[10].mxu1  ;;  %v753_v15 = vld [vmem:[%s1576_s3 + $0x8] sm:$0xff] }
 0x109   : > { %651 = vst [vmem:[%s1413_s10 + $0x20] sm:$0xff] %v576_v13  ;;  %v695_v22 = vadd.f32 %v694_v51, %v576_v13  ;;  %653 = vst [vmem:[%s1413_s10 + $0x30] sm:$0xff] %v629_v14  ;;  %v580_v23 = vadd.f32 %v579_v20, %v1406_v29  ;;  %v633_v24 = vadd.f32 %v632_v21, %v1406_v29  ;;  %v581_v25 = vpop.f32.mrb[11].mxu0  ;;  %v634_v26 = vpop.f32.mrb[11].mxu1  ;;  %v754_v20 = vld [vmem:[%s1576_s3 + $0x10] sm:$0xff]  ;;  %v755_v21 = vld [vmem:[%s1576_s3 + $0x18] sm:$0xff] }
 0x10a   : > { %652 = vst [vmem:[%s1413_s10 + $0x28] sm:$0xff] %v578_v18  ;;  %654 = vst [vmem:[%s1413_s10 + $0x38] sm:$0xff] %v631_v19  ;;  %v582_v31 = vadd.f32 %v581_v25, %v1406_v29  ;;  %v635_v28 = vadd.f32 %v634_v26, %v1406_v29 }
 0x10b   : > { %v696_v32 = vadd.f32 %v695_v22, %v578_v18  ;;  %659 = vst [vmem:[%s1413_s10 + $0x60] sm:$0xff] %v580_v23  ;;  %v704_v33 = vadd.f32 %v703_v59, %v580_v23  ;;  %661 = vst [vmem:[%s1413_s10 + $0x70] sm:$0xff] %v633_v24  ;;  %v1091_v23 = vpack.c.bf16 %v755_v21, %v754_v20 }
 0x10c   : > { %660 = vst [vmem:[%s1413_s10 + $0x68] sm:$0xff] %v582_v31  ;;  %662 = vst [vmem:[%s1413_s10 + $0x78] sm:$0xff] %v635_v28 }
 0x10d   : > { %v705_v34 = vadd.f32 %v704_v33, %v582_v31  ;;  %v697_v35 = vadd.f32 %v696_v32, %v629_v14  ;;  %v752_v14 = vld [vmem:[%s1576_s3] sm:$0xff] }
 0x10e   : > { %v585_v36 = vpop.f32.mrb[12].mxu0  ;;  %v638_v37 = vpop.f32.mrb[12].mxu1  ;;  %v1088_v16 = vpack.c.bf16 %v753_v15, %v752_v14 }
 0x10f   : > { %v586_v38 = vadd.f32 %v585_v36, %v1408_v30  ;;  %v639_v39 = vadd.f32 %v638_v37, %v1408_v30  ;;  %v587_v40 = vpop.f32.mrb[13].mxu0  ;;  %v640_v41 = vpop.f32.mrb[13].mxu1  ;;  %v698_v29 = vadd.f32 %v697_v35, %v631_v19  ;;  %v706_v42 = vadd.f32 %v705_v34, %v633_v24 }
 0x110   : > { %v588_v43 = vadd.f32 %v587_v40, %v1408_v30  ;;  %v641_v44 = vadd.f32 %v640_v41, %v1408_v30  ;;  %v589_v45 = vpop.f32.mrb[14].mxu0  ;;  %v642_v46 = vpop.f32.mrb[14].mxu1  ;;  %v773_v24 = vlaneseq }
 0x111   : > { %667 = vst [vmem:[%s1413_s10 + $0xa0] sm:$0xff] %v586_v38  ;;  %v713_v47 = vadd.f32 %v712_v9, %v586_v38  ;;  %669 = vst [vmem:[%s1413_s10 + $0xb0] sm:$0xff] %v639_v39  ;;  %v590_v48 = vadd.f32 %v589_v45, %v1431_v50  ;;  %v643_v49 = vadd.f32 %v642_v46, %v1431_v50  ;;  %v591_v51 = vpop.f32.mrb[15].mxu0  ;;  %v644_v52 = vpop.f32.mrb[15].mxu1  ;;  %699 = vadd.xlane.f32.xlu0 %v698_v29  ;;  %v756_v46 = vld [vmem:[%s1577_s4] sm:$0x1] }
 0x112   : > { %v707_v53 = vadd.f32 %v706_v42, %v635_v28  ;;  %668 = vst [vmem:[%s1413_s10 + $0xa8] sm:$0xff] %v588_v43  ;;  %670 = vst [vmem:[%s1413_s10 + $0xb8] sm:$0xff] %v641_v44  ;;  %v592_v30 = vadd.f32 %v591_v51, %v1431_v50  ;;  %v645_v54 = vadd.f32 %v644_v52, %v1431_v50  ;;  %v1242_v50 = vmov 0.0|0.0  }
 0x113   : > { %v714_v55 = vadd.f32 %v713_v47, %v588_v43  ;;  %675 = vst [vmem:[%s1413_s10 + $0xe0] sm:$0xff] %v590_v48  ;;  %v722_v56 = vadd.f32 %v721_v17, %v590_v48  ;;  %677 = vst [vmem:[%s1413_s10 + $0xf0] sm:$0xff] %v643_v49  ;;  %1087 = vmatprep.subr.bf16.mxu0 %v1242_v50  ;;  %v774_v25 = vand.u32 127, %v773_v24  ;;  %v776_v28 = vshrl.u32 %v773_v24, 7 }
 0x114   : > { %708 = vadd.xlane.f32.xlu1 %v707_v53  ;;  %676 = vst [vmem:[%s1413_s10 + $0xe8] sm:$0xff] %v592_v30  ;;  %678 = vst [vmem:[%s1413_s10 + $0xf8] sm:$0xff] %v645_v54  ;;  %1089 = vmatpush3.bf16.msra.mxu0 %v1088_v16 }
 0x115   : > { %v723_v57 = vadd.f32 %v722_v56, %v592_v30  ;;  %v715_v58 = vadd.f32 %v714_v55, %v639_v39  ;;  %1090 = vmatprep.subr.bf16.mxu0 %v1242_v50  ;;  %v779_v26 = vadd.s32 4294967288, %v774_v25  ;;  %v786_v31 = vadd.s32 4294967280, %v774_v25 }
 0x116   : > { %v793_v34 = vadd.s32 4294967272, %v774_v25  ;;  %v777_v37 = vsub.s32 %v774_v25, %v776_v28 }
 0x117   : > { %v716_v59 = vadd.f32 %v715_v58, %v641_v44  ;;  %v724_v60 = vadd.f32 %v723_v57, %v643_v49  ;;  %v782_v33 = vsub.s32 %v779_v26, %v776_v28  ;;  %v789_v36 = vsub.s32 %v786_v31, %v776_v28 }
 0x118   : > { %1092 = vmatpush3.bf16.msra.mxu0 %v1091_v23  ;;  %v796_v40 = vsub.s32 %v793_v34, %v776_v28 }
 0x119   : > { %717 = vadd.xlane.f32.xlu0 %v716_v59  ;;  %v725_v61 = vadd.f32 %v724_v60, %v645_v54 }
 0x11d   : > { %726 = vadd.xlane.f32.xlu0 %v725_v61 }
 0x19e   : > { %v700_v63 = vpop.xlane.xlu0 %699 }
 0x19f   : > { %v728_v1 = vadd.f32 %v700_v63, %v688_v62 }
 0x1a1   : > { %v709_v2 = vpop.xlane.xlu1 %708  ;;  %733 = vst.msk [vmem:[%s1389_s23] sm:$0xff] %vm683_vm2, %v728_v1 }
 0x1a2   : > { %v729_v3 = vadd.f32 %v709_v2, %v689_v0 }
 0x1a4   : > { %734 = vst.msk [vmem:[%s1389_s23 + $0x8] sm:$0xff] %vm683_vm2, %v729_v3 }
 0x1a6   : > { %v718_v5 = vpop.xlane.xlu0 %717 }
 0x1a7   : > { %v730_v6 = vadd.f32 %v718_v5, %v690_v4 }
 0x1a8   : > { %v740_v8 = vld [vmem:[%s1389_s23] sm:$0xff] }
 0x1a9   : > { %735 = vst.msk [vmem:[%s1389_s23 + $0x10] sm:$0xff] %vm683_vm2, %v730_v6  ;;  %v744_v9 = vmul.f32 0.0009765625, %v740_v8 }
 0x1aa   : > { %v727_v10 = vpop.xlane.xlu0 %726 }
 0x1ab   : > { %v741_v11 = vld [vmem:[%s1389_s23 + $0x8] sm:$0xff]  ;;  %v731_v12 = vadd.f32 %v727_v10, %v691_v7  ;;  %762 = vperm.xlu1 %1153, %v744_v9   ;;  %748 = vst.msk [vmem:[%s1389_s23] sm:$0xff] %vm683_vm2, %v744_v9 }
 0x1ac   : > { %v745_v13 = vmul.f32 0.0009765625, %v741_v11 }
 0x1ad   : > { %736 = vst.msk [vmem:[%s1389_s23 + $0x18] sm:$0xff] %vm683_vm2, %v731_v12 }
 0x1ae   : > { %749 = vst.msk [vmem:[%s1389_s23 + $0x8] sm:$0xff] %vm683_vm2, %v745_v13  ;;  %765 = vperm.xlu0 %1152, %v745_v13  }
 0x1b0   : > { %v742_v17 = vld [vmem:[%s1389_s23 + $0x10] sm:$0xff] }
 0x1b1   : > { %v746_v18 = vmul.f32 0.0009765625, %v742_v17 }
 0x1b3   : > { %768 = vperm.xlu1 %1153, %v746_v18   ;;  %750 = vst.msk [vmem:[%s1389_s23 + $0x10] sm:$0xff] %vm683_vm2, %v746_v18 }
 0x1b4   : > { %v743_v19 = vld [vmem:[%s1389_s23 + $0x18] sm:$0xff] }
 0x1b5   : > { %v747_v22 = vmul.f32 0.0009765625, %v743_v19 }
 0x1b7   : > { %771 = vperm.xlu1 %1153, %v747_v22   ;;  %751 = vst.msk [vmem:[%s1389_s23 + $0x18] sm:$0xff] %vm683_vm2, %v747_v22  ;;  %s313_s23 = sand.u32 1, %s1222_s25  }
 0x1b8   : > { %s314_s10 = scalar_lea.vmem [#allocation2], %s313_s23  ;;  %s889_s18 = scalar_lea.sflag [#allocation3], %s313_s23 }
 0x1b9   : > { %s908_s15 = sshll.u32 %s314_s10, 4  ;;  %s1528_s15 = int_to_ptr.vmem [resolvable:$true] %s908_s15 }
 0x1ba   : > { %s1160_s19 = scalar_lea.vmem %s1528_s15, 16  ;;  %p1167_p1 = scmp.lt.s32.totalorder %s1528_s15, %s1165_s21 }
 0x1bb   : > { %p1161_p12 = scmp.ne.s32.totalorder %s1528_s15, %s1160_s19  ;;  %p1168_p2 = scmp.lt.s32.totalorder %s1166_s22, %s1160_s19 }
 0x1bd   : > { %p1162_p13 = pnand %p1161_p12, %p1325_p4  ;;  %p1169_p3 = por %p1168_p2, %p1167_p1 }
 0x1bf   : > { %p1163_p0 = pneg %p1162_p13 }
 0x1c1   : > { %p1170_p5 = pnand %p1169_p3, %p1163_p0 }
 0x22a   : > { %v763_v32 = vpop.permute.xlu1 %762 }
 0x22b   : > { %v778_v29 = vrot.slane %v763_v32, %v777_v37 }
 0x22d   : > { %v766_v35 = vpop.permute.xlu0 %765 }
 0x22e   : > { %v783_v39 = vrot.slane %v766_v35, %v782_v33 }
 0x230   : > { %v785_v42 = vsel %vm784_vm4, %v783_v39, %v778_v29 }
 0x232   : > { %v769_v38 = vpop.permute.xlu1 %768 }
 0x233   : > { %v790_v41 = vrot.slane %v769_v38, %v789_v36 }
 0x235   : > { %v792_v44 = vsel %vm791_vm5, %v790_v41, %v785_v42 }
 0x236   : > { %v772_v27 = vpop.permute.xlu1 %771 }
 0x237   : > { %v797_v43 = vrot.slane %v772_v27, %v796_v40 }
 0x239   : > { %v799_v45 = vsel %vm798_vm6, %v797_v43, %v792_v44 }
 0x23a   : > { %1085 = vmatmul.mubr.msk.f32.vlgmr.msra.gmra.mrb[16].mxu0 %vm800_vm7, %v799_v45 }
 0x30d   : > { %v869_v47 = vpop.f32.mrb[16].mxu0 }
 0x30e   : > { %v870_v48 = vadd.f32 %v869_v47, %v756_v46  ;;  %v1086_v49 = vpop.f32.mrb[17].mxu0 }
 0x310   : > { %873 = vst [vmem:[%s314_s10] sm:$0x1] %v870_v48 }
 0x311   : > { %1173 = shalt.err (!%p1170_p5)
}
 0x312   : > { %s1174_s23 = scalar_lea.hbm %s1526_s17, 16  ;;  %s1178_s8 = scalar_lea.hbm %s1580_s7, 32 }
 0x313   : > { %p1175_p6 = scmp.ne.s32.totalorder %s1526_s17, %s1174_s23  ;;  %p1179_p10 = scmp.lt.u32.totalorder %s1526_s17, %s1580_s7 }
 0x314   : > { %p1180_p11 = scmp.lt.u32.totalorder %s1178_s8, %s1174_s23  ;;  %p1182_p13 = scmp.lt.u32.totalorder %s1174_s23, %s1526_s17 }
 0x315   : > { %p1176_p7 = pnand %p1175_p6, %p1325_p4 }
 0x316   : > { %p1181_p12 = por %p1180_p11, %p1179_p10 }
 0x317   : > { %p1177_p9 = pneg %p1176_p7 }
 0x318   : > { %p1183_p0 = por %p1182_p13, %p1181_p12 }
 0x31a   : > { %p1184_p1 = pnand %p1183_p0, %p1177_p9 }
 0x31c   : > { %1187 = shalt.err (!%p1184_p1)
}
 0x31d   : > { %1093 = dma.vmem_to_hbm [thread:$0]  (%p1325_p4), %s1528_s15, 16, %s1526_s17, %s889_s18  }
 0x31e PF: > { %p1099_p2 = scmp.ge.s32.totalorder %s1238_s29, 2  ;;  %s940_s16 = sand.u32 1, %s1218_s24  }
 0x31f   : > { %s941_s19 = scalar_lea.sflag [#allocation3], %s940_s16 }
 0x320   : > { %p1096_p3 = pnand %p1099_p2, %p1332_p8 }
 0x322   : > { %1213 = dma.done.wait (!%p1096_p3), %s941_s19, 16  }
 0x323   : > { %1215 = vsyncadd (!%p1096_p3), %s941_s19, 4294967280  ;;  %s21_s29 = sadd.s32 1, %s1238_s29   ;;  %s1583_s24 = smov %s1222_s25 }
 0x324   : > { %p18_p5 = scmp.ge.s32.totalorder %s21_s29, 4   ;;  %s1584_s25 = smov %s1226_s26 }
 0x325   : > { %s1585_s26 = smov %s1338_s14  ;;  %s1586_s27 = smov %s1234_s28 }
 0x326   : > { %s1587_s28 = smov %s1589_s9  ;;  %20 = sbr.rel (!%p18_p5) target bundleno = 4 (0x4), region = 107 }
 0x32d   :  { %945 = vsyncpa [#allocation3], 1 }
 0x32e   :  { %947 = vsyncpa [#allocation3 + $0x1], 1 }

</bundles_post_ra>
